<compile_context>
chip_gen: v5e
topology: v5e:2x2
jax: 0.10.0
libtpu: 0.0.40
codegen_flags: <defaults>
</compile_context>

<pallas_src>
import jax
import jax.numpy as jnp
from jax.experimental import pallas as pl
from jax.experimental.pallas import tpu as pltpu

MAX_LENGTH = 40   # kept for parity with the reference module (unused by the head)
N_OUT_PAD = 128   # lane-dense padded logit width


def _round_up(x, m):
    return ((x + m - 1) // m) * m


def _mlp_head_kernel(a_ref, b_ref, v_ref, w1_ref, b1_ref, w2_ref, b2_ref, o_ref):
    # a/b/v: (TB, H) f32 (cast to bf16 in-kernel)   w1: (3H, H) bf16
    # b1: (1, H) f32    w2: (H, 128) bf16 (gamma folded, zero-padded)
    # b2: (1, 128) f32 (beta folded)                o: (TB, 128) bf16
    H = a_ref.shape[1]

    # Linear(3H -> H): concat fused as three bf16 MXU dots against row-slices of the
    # resident W1; the f32->bf16 input cast rides the VPU underneath the MXU.
    h = jnp.dot(a_ref[...].astype(jnp.bfloat16), w1_ref[0:H, :],
                preferred_element_type=jnp.float32)
    h = h + jnp.dot(b_ref[...].astype(jnp.bfloat16), w1_ref[H:2 * H, :],
                    preferred_element_type=jnp.float32)
    h = h + jnp.dot(v_ref[...].astype(jnp.bfloat16), w1_ref[2 * H:3 * H, :],
                    preferred_element_type=jnp.float32)
    h = h + b1_ref[...]

    # GeLU: tanh approximation so the transcendental lands on the EUP slot instead of
    # an erf polynomial on the VALU (difference ~1e-3, below bf16 matmul noise).
    h = jax.nn.gelu(h, approximate=True)

    # BertLayerNorm (eps=1e-12) over the last axis, single-pass stats (E[h^2] - mu^2).
    mu = jnp.mean(h, axis=-1, keepdims=True)
    ms = jnp.mean(h * h, axis=-1, keepdims=True)
    var = jnp.maximum(ms - mu * mu, 0.0)
    h = (h - mu) * jax.lax.rsqrt(var + 1e-12)
    # gamma/beta affine was folded into W2'/b2' in the wrapper.

    # Linear(H -> 3) padded to 128 output lanes (unmasked vst); bf16 writeback.
    y = jnp.dot(h.astype(jnp.bfloat16), w2_ref[...],
                preferred_element_type=jnp.float32) + b2_ref[...]
    o_ref[...] = y.astype(o_ref.dtype)


def _build_call(B, H, TB, single_buffer_weights, vmem_limit_bytes):
    n_grid = pl.cdiv(B, TB)

    def const(shape):
        if single_buffer_weights:
            # Constant-index blocks never change -> single-buffer them to save VMEM.
            return pl.BlockSpec(shape, lambda i: (0, 0), pipeline_mode=pl.Buffered(1))
        return pl.BlockSpec(shape, lambda i: (0, 0))

    row_spec = pl.BlockSpec((TB, H), lambda i: (i, 0))

    return pl.pallas_call(
        _mlp_head_kernel,
        out_shape=jax.ShapeDtypeStruct((B, N_OUT_PAD), jnp.bfloat16),
        grid_spec=pltpu.PrefetchScalarGridSpec(
            num_scalar_prefetch=0,
            grid=(n_grid,),
            in_specs=[
                row_spec,                 # a (TB, H)
                row_spec,                 # b (TB, H)
                row_spec,                 # v (TB, H)
                const((3 * H, H)),        # W1 resident (bf16)
                const((1, H)),            # b1 resident (f32)
                const((H, N_OUT_PAD)),    # W2' (gamma-folded, padded) resident
                const((1, N_OUT_PAD)),    # b2' (beta-folded, padded) resident
            ],
            out_specs=pl.BlockSpec((TB, N_OUT_PAD), lambda i: (i, 0)),
        ),
        compiler_params=pltpu.CompilerParams(
            dimension_semantics=("parallel",),   # megacore batch sharding on v7x
            vmem_limit_bytes=vmem_limit_bytes,
        ),
    )


def mlp_head(a_pooled, b_pooled, v_pooled, w1, b1, gamma, beta, w2, b2, *,
             block_b=512):
    """Pooled encoder outputs (B, H) x3 -> logits (B, n_out) float32."""
    B, H = a_pooled.shape
    n_out = w2.shape[1]

    # One-time parameter prep (tiny vs the (B,H) activations):
    #   * W1 -> bf16 MXU operand.
    #   * gamma folded into W2, beta folded into b2:
    #       (LN(h)*g + be) @ W2 + b2 == LN(h) @ (g[:,None]*W2) + (be @ W2 + b2).
    #   * W2/b2 zero-padded to 128 output lanes (lane-dense unmasked stores).
    w1_16 = w1.astype(jnp.bfloat16)
    b1_r = b1.reshape(1, H).astype(jnp.float32)
    w2_f = w2.astype(jnp.float32)
    w2_fold = gamma.astype(jnp.float32)[:, None] * w2_f
    b2_fold = (b2.astype(jnp.float32)
               + beta.astype(jnp.float32) @ w2_f).reshape(1, -1)
    w2_p = jnp.zeros((H, N_OUT_PAD), jnp.bfloat16).at[:, :n_out].set(
        w2_fold.astype(jnp.bfloat16))
    b2_p = jnp.zeros((1, N_OUT_PAD), jnp.float32).at[:, :n_out].set(b2_fold)

    # Batch tiling: TB multiple of 8, capped so the grid has >= 2 steps when the batch
    # allows it (keeps both v7x TensorCores busy).  No wrapper-side pad/cast of a/b/v:
    # partial last blocks are handled by Pallas (out-of-range rows compute garbage but
    # are row-independent and never written back).
    TB = min(block_b, max(8, _round_up(pl.cdiv(B, 2), 8)))

    # Rough VMEM budget: double-buffered f32 input tiles + bf16 output tiles + resident
    # weights + f32 intermediates; clamp to stay under v7x's 64 MiB per-TC VMEM.
    est = (3 * 2 * TB * H * 4                      # a/b/v tiles, double-buffered
           + 2 * TB * N_OUT_PAD * 2                # bf16 output tiles
           + 2 * (3 * H * H + H * N_OUT_PAD) * 2   # weights (worst case double-buffered)
           + 6 * TB * H * 4                        # f32 intermediates headroom
           + (4 << 20))
    vmem_limit = int(min(max(est, 32 << 20), 60 << 20))

    args = (a_pooled, b_pooled, v_pooled, w1_16, b1_r, w2_p, b2_p)
    try:
        out = _build_call(B, H, TB, True, vmem_limit)(*args)
    except Exception:
        # pipeline_mode=pl.Buffered(1) unsupported on this jax version -> fall back to
        # default double-buffered resident weights (only costs extra weight VMEM).
        out = _build_call(B, H, TB, False, vmem_limit)(*args)

    return out[:, :n_out].astype(jnp.float32)


def reference_forward(a, b, v, w1, b1, gamma, beta, w2, b2):
    # Matches the PyTorch module semantics (exact erf GeLU, two-pass LayerNorm stats).
    x = jnp.concatenate([a, b, v], axis=1)
    h = x @ w1 + b1.reshape(1, -1)
    h = h * 0.5 * (1.0 + jax.lax.erf(h / jnp.sqrt(2.0)))
    mu = jnp.mean(h, axis=-1, keepdims=True)
    var = jnp.mean((h - mu) ** 2, axis=-1, keepdims=True)
    h = (h - mu) / jnp.sqrt(var + 1e-12)
    h = h * gamma.reshape(1, -1) + beta.reshape(1, -1)
    return h @ w2 + b2.reshape(1, -1)


if __name__ == "__main__":
    B = 8          # batch
    HID = 32       # stand-in for lxrt_encoder.dim (768 in the real model)
    N_ANS = 3

    key = jax.random.PRNGKey(0)
    ks = jax.random.split(key, 8)

    # Three pooled encoder outputs (stand-ins for a/b/v pooled outputs).
    a_pooled = jax.random.normal(ks[0], (B, HID), jnp.float32)
    b_pooled = jax.random.normal(ks[1], (B, HID), jnp.float32)
    v_pooled = jax.random.normal(ks[2], (B, HID), jnp.float32)

    # Deterministic BERT-style init (normal(0, 0.02) weights, zero bias,
    # LayerNorm gamma=1, beta=0), matching init_bert_weights semantics.
    w1 = 0.02 * jax.random.normal(ks[3], (3 * HID, HID), jnp.float32)
    b1 = jnp.zeros((HID,), jnp.float32)
    gamma = jnp.ones((HID,), jnp.float32)
    beta = jnp.zeros((HID,), jnp.float32)
    w2 = 0.02 * jax.random.normal(ks[4], (HID, N_ANS), jnp.float32)
    b2 = jnp.zeros((N_ANS,), jnp.float32)

    logit = mlp_head(a_pooled, b_pooled, v_pooled, w1, b1, gamma, beta, w2, b2)
    logit = jax.block_until_ready(logit)

    ref = reference_forward(a_pooled, b_pooled, v_pooled, w1, b1, gamma, beta, w2, b2)
    assert logit.shape == (B, N_ANS)
    # bf16 MXU operands, bf16 writeback and tanh-approx GeLU -> loosened tolerance
    # vs the all-f32 erf reference.
    assert jnp.allclose(logit, ref, atol=2e-2, rtol=2e-2), "mismatch vs JAX reference"

    print("KERNEL_OK")
</pallas_src>

<mosaic_0001>
module attributes {stable_mosaic.version = 11 : i64} {
  func.func @_mlp_head_kernel(%arg0: i32, %arg1: memref<8x32xf32, #tpu.memory_space<vmem>>, %arg2: memref<8x32xf32, #tpu.memory_space<vmem>>, %arg3: memref<8x32xf32, #tpu.memory_space<vmem>>, %arg4: memref<96x32xbf16, #tpu.memory_space<vmem>>, %arg5: memref<1x32xf32, #tpu.memory_space<vmem>>, %arg6: memref<32x128xbf16, #tpu.memory_space<vmem>>, %arg7: memref<1x128xf32, #tpu.memory_space<vmem>>, %arg8: memref<8x128xbf16, #tpu.memory_space<vmem>>) attributes {dimension_semantics = [#tpu.dimension_semantics<parallel>], iteration_bounds = array<i64: 1>, scalar_prefetch = 0 : i64, scratch_operands = 0 : i64, tpu.core_type = #tpu.core_type<tc>, window_params = [{transform_indices = @transform_0, window_bounds = array<i64: 8, 32>}, {transform_indices = @transform_1, window_bounds = array<i64: 8, 32>}, {transform_indices = @transform_2, window_bounds = array<i64: 8, 32>}, {pipeline_mode = #tpu.pipeline_mode<synchronous>, transform_indices = @transform_3, window_bounds = array<i64: 96, 32>}, {pipeline_mode = #tpu.pipeline_mode<synchronous>, transform_indices = @transform_4, window_bounds = array<i64: 1, 32>}, {pipeline_mode = #tpu.pipeline_mode<synchronous>, transform_indices = @transform_5, window_bounds = array<i64: 32, 128>}, {pipeline_mode = #tpu.pipeline_mode<synchronous>, transform_indices = @transform_6, window_bounds = array<i64: 1, 128>}, {transform_indices = @transform_7, window_bounds = array<i64: 8, 128>}]} {
    %c0 = arith.constant 0 : index
    %c0_0 = arith.constant 0 : index
    %0 = vector.load %arg1[%c0, %c0_0] : memref<8x32xf32, #tpu.memory_space<vmem>>, vector<8x32xf32>
    %1 = arith.truncf %0 : vector<8x32xf32> to vector<8x32xbf16>
    %c0_1 = arith.constant 0 : index
    %c0_2 = arith.constant 0 : index
    %2 = vector.load %arg4[%c0_1, %c0_2] : memref<96x32xbf16, #tpu.memory_space<vmem>>, vector<32x32xbf16>
    %cst = arith.constant dense<0.000000e+00> : vector<8x32xf32>
    %3 = tpu.matmul %1, %2, %cst {dimension_numbers = #tpu.dot_dimension_numbers<[1], [0], [0], [1], [0, 0, 1, 1], [], []>} : vector<8x32xbf16>, vector<32x32xbf16>, vector<8x32xf32> -> vector<8x32xf32>
    %c0_3 = arith.constant 0 : index
    %c0_4 = arith.constant 0 : index
    %4 = vector.load %arg2[%c0_3, %c0_4] : memref<8x32xf32, #tpu.memory_space<vmem>>, vector<8x32xf32>
    %5 = arith.truncf %4 : vector<8x32xf32> to vector<8x32xbf16>
    %c32 = arith.constant 32 : index
    %c0_5 = arith.constant 0 : index
    %6 = vector.load %arg4[%c32, %c0_5] : memref<96x32xbf16, #tpu.memory_space<vmem>>, vector<32x32xbf16>
    %cst_6 = arith.constant dense<0.000000e+00> : vector<8x32xf32>
    %7 = tpu.matmul %5, %6, %cst_6 {dimension_numbers = #tpu.dot_dimension_numbers<[1], [0], [0], [1], [0, 0, 1, 1], [], []>} : vector<8x32xbf16>, vector<32x32xbf16>, vector<8x32xf32> -> vector<8x32xf32>
    %8 = arith.addf %3, %7 : vector<8x32xf32>
    %c0_7 = arith.constant 0 : index
    %c0_8 = arith.constant 0 : index
    %9 = vector.load %arg3[%c0_7, %c0_8] : memref<8x32xf32, #tpu.memory_space<vmem>>, vector<8x32xf32>
    %10 = arith.truncf %9 : vector<8x32xf32> to vector<8x32xbf16>
    %c64 = arith.constant 64 : index
    %c0_9 = arith.constant 0 : index
    %11 = vector.load %arg4[%c64, %c0_9] : memref<96x32xbf16, #tpu.memory_space<vmem>>, vector<32x32xbf16>
    %cst_10 = arith.constant dense<0.000000e+00> : vector<8x32xf32>
    %12 = tpu.matmul %10, %11, %cst_10 {dimension_numbers = #tpu.dot_dimension_numbers<[1], [0], [0], [1], [0, 0, 1, 1], [], []>} : vector<8x32xbf16>, vector<32x32xbf16>, vector<8x32xf32> -> vector<8x32xf32>
    %13 = arith.addf %8, %12 : vector<8x32xf32>
    %c0_11 = arith.constant 0 : index
    %c0_12 = arith.constant 0 : index
    %14 = vector.load %arg5[%c0_11, %c0_12] : memref<1x32xf32, #tpu.memory_space<vmem>>, vector<1x32xf32>
    %15 = vector.broadcast %14 : vector<1x32xf32> to vector<8x32xf32>
    %16 = arith.addf %13, %15 : vector<8x32xf32>
    %17 = arith.mulf %16, %16 : vector<8x32xf32>
    %18 = arith.mulf %16, %17 : vector<8x32xf32>
    %cst_13 = arith.constant 4.471500e-02 : f32
    %19 = vector.broadcast %cst_13 : f32 to vector<8x32xf32>
    %20 = arith.mulf %19, %18 : vector<8x32xf32>
    %21 = arith.addf %16, %20 : vector<8x32xf32>
    %cst_14 = arith.constant 0.797884583 : f32
    %22 = vector.broadcast %cst_14 : f32 to vector<8x32xf32>
    %23 = arith.mulf %22, %21 : vector<8x32xf32>
    %24 = math.tanh %23 : vector<8x32xf32>
    %cst_15 = arith.constant 1.000000e+00 : f32
    %25 = vector.broadcast %cst_15 : f32 to vector<8x32xf32>
    %26 = arith.addf %25, %24 : vector<8x32xf32>
    %cst_16 = arith.constant 5.000000e-01 : f32
    %27 = vector.broadcast %cst_16 : f32 to vector<8x32xf32>
    %28 = arith.mulf %27, %26 : vector<8x32xf32>
    %29 = arith.mulf %16, %28 : vector<8x32xf32>
    %cst_17 = arith.constant dense<0.000000e+00> : vector<8xf32>
    %30 = vector.multi_reduction <add>, %29, %cst_17 [1] : vector<8x32xf32> to vector<8xf32>
    %31 = vector.shape_cast %30 : vector<8xf32> to vector<8x1xf32>
    %cst_18 = arith.constant 3.200000e+01 : f32
    %32 = vector.broadcast %cst_18 : f32 to vector<8x1xf32>
    %33 = arith.divf %31, %32 : vector<8x1xf32>
    %34 = arith.mulf %29, %29 : vector<8x32xf32>
    %cst_19 = arith.constant dense<0.000000e+00> : vector<8xf32>
    %35 = vector.multi_reduction <add>, %34, %cst_19 [1] : vector<8x32xf32> to vector<8xf32>
    %36 = vector.shape_cast %35 : vector<8xf32> to vector<8x1xf32>
    %cst_20 = arith.constant 3.200000e+01 : f32
    %37 = vector.broadcast %cst_20 : f32 to vector<8x1xf32>
    %38 = arith.divf %36, %37 : vector<8x1xf32>
    %39 = arith.mulf %33, %33 : vector<8x1xf32>
    %40 = arith.subf %38, %39 : vector<8x1xf32>
    %cst_21 = arith.constant 0.000000e+00 : f32
    %41 = vector.broadcast %cst_21 : f32 to vector<8x1xf32>
    %42 = arith.maximumf %40, %41 : vector<8x1xf32>
    %43 = vector.broadcast %33 : vector<8x1xf32> to vector<8x32xf32>
    %44 = arith.subf %29, %43 : vector<8x32xf32>
    %cst_22 = arith.constant 9.99999996E-13 : f32
    %45 = vector.broadcast %cst_22 : f32 to vector<8x1xf32>
    %46 = arith.addf %42, %45 : vector<8x1xf32>
    %47 = math.rsqrt %46 : vector<8x1xf32>
    %48 = vector.broadcast %47 : vector<8x1xf32> to vector<8x32xf32>
    %49 = arith.mulf %44, %48 : vector<8x32xf32>
    %50 = arith.truncf %49 : vector<8x32xf32> to vector<8x32xbf16>
    %c0_23 = arith.constant 0 : index
    %c0_24 = arith.constant 0 : index
    %51 = vector.load %arg6[%c0_23, %c0_24] : memref<32x128xbf16, #tpu.memory_space<vmem>>, vector<32x128xbf16>
    %cst_25 = arith.constant dense<0.000000e+00> : vector<8x128xf32>
    %52 = tpu.matmul %50, %51, %cst_25 {dimension_numbers = #tpu.dot_dimension_numbers<[1], [0], [0], [1], [0, 0, 1, 1], [], []>} : vector<8x32xbf16>, vector<32x128xbf16>, vector<8x128xf32> -> vector<8x128xf32>
    %c0_26 = arith.constant 0 : index
    %c0_27 = arith.constant 0 : index
    %53 = vector.load %arg7[%c0_26, %c0_27] : memref<1x128xf32, #tpu.memory_space<vmem>>, vector<1x128xf32>
    %54 = vector.broadcast %53 : vector<1x128xf32> to vector<8x128xf32>
    %55 = arith.addf %52, %54 : vector<8x128xf32>
    %56 = arith.truncf %55 : vector<8x128xf32> to vector<8x128xbf16>
    %c0_28 = arith.constant 0 : index
    %c0_29 = arith.constant 0 : index
    %57 = vector.load %arg8[%c0_28, %c0_29] : memref<8x128xbf16, #tpu.memory_space<vmem>>, vector<8x128xbf16>
    tpu.vector_store %arg8[%c0_28, %c0_29], %56 {strides = array<i32>} : memref<8x128xbf16, #tpu.memory_space<vmem>>, vector<8x128xbf16>,
    return
  }
  func.func @transform_0(%arg0: i32) -> (i32, i32) {
    %c0_i32 = arith.constant 0 : i32
    %c0_i32_0 = arith.constant 0 : i32
    return %arg0, %c0_i32 : i32, i32
  }
  func.func @transform_1(%arg0: i32) -> (i32, i32) {
    %c0_i32 = arith.constant 0 : i32
    %c0_i32_0 = arith.constant 0 : i32
    return %arg0, %c0_i32 : i32, i32
  }
  func.func @transform_2(%arg0: i32) -> (i32, i32) {
    %c0_i32 = arith.constant 0 : i32
    %c0_i32_0 = arith.constant 0 : i32
    return %arg0, %c0_i32 : i32, i32
  }
  func.func @transform_3(%arg0: i32) -> (i32, i32) {
    %c0_i32 = arith.constant 0 : i32
    %c0_i32_0 = arith.constant 0 : i32
    %c0_i32_1 = arith.constant 0 : i32
    return %c0_i32, %c0_i32_0 : i32, i32
  }
  func.func @transform_4(%arg0: i32) -> (i32, i32) {
    %c0_i32 = arith.constant 0 : i32
    %c0_i32_0 = arith.constant 0 : i32
    %c0_i32_1 = arith.constant 0 : i32
    return %c0_i32, %c0_i32_0 : i32, i32
  }
  func.func @transform_5(%arg0: i32) -> (i32, i32) {
    %c0_i32 = arith.constant 0 : i32
    %c0_i32_0 = arith.constant 0 : i32
    %c0_i32_1 = arith.constant 0 : i32
    return %c0_i32, %c0_i32_0 : i32, i32
  }
  func.func @transform_6(%arg0: i32) -> (i32, i32) {
    %c0_i32 = arith.constant 0 : i32
    %c0_i32_0 = arith.constant 0 : i32
    %c0_i32_1 = arith.constant 0 : i32
    return %c0_i32, %c0_i32_0 : i32, i32
  }
  func.func @transform_7(%arg0: i32) -> (i32, i32) {
    %c0_i32 = arith.constant 0 : i32
    %c0_i32_0 = arith.constant 0 : i32
    return %arg0, %c0_i32 : i32, i32
  }
}

module attributes {stable_mosaic.version = 11 : i64} {
  func.func @_mlp_head_kernel(%arg0: i32, %arg1: memref<8x32xf32, #tpu.memory_space<vmem>>, %arg2: memref<8x32xf32, #tpu.memory_space<vmem>>, %arg3: memref<8x32xf32, #tpu.memory_space<vmem>>, %arg4: memref<96x32xbf16, #tpu.memory_space<vmem>>, %arg5: memref<1x32xf32, #tpu.memory_space<vmem>>, %arg6: memref<32x128xbf16, #tpu.memory_space<vmem>>, %arg7: memref<1x128xf32, #tpu.memory_space<vmem>>, %arg8: memref<8x128xbf16, #tpu.memory_space<vmem>>) attributes {dimension_semantics = [#tpu.dimension_semantics<parallel>], iteration_bounds = array<i64: 1>, scalar_prefetch = 0 : i64, scratch_operands = 0 : i64, tpu.core_type = #tpu.core_type<tc>, window_params = [{transform_indices = @transform_0, window_bounds = array<i64: 8, 32>}, {transform_indices = @transform_1, window_bounds = array<i64: 8, 32>}, {transform_indices = @transform_2, window_bounds = array<i64: 8, 32>}, {pipeline_mode = #tpu.pipeline_mode<synchronous>, transform_indices = @transform_3, window_bounds = array<i64: 96, 32>}, {pipeline_mode = #tpu.pipeline_mode<synchronous>, transform_indices = @transform_4, window_bounds = array<i64: 1, 32>}, {pipeline_mode = #tpu.pipeline_mode<synchronous>, transform_indices = @transform_5, window_bounds = array<i64: 32, 128>}, {pipeline_mode = #tpu.pipeline_mode<synchronous>, transform_indices = @transform_6, window_bounds = array<i64: 1, 128>}, {transform_indices = @transform_7, window_bounds = array<i64: 8, 128>}]} {
    %c0 = arith.constant 0 : index
    %c0_0 = arith.constant 0 : index
    %0 = vector.load %arg1[%c0, %c0_0] : memref<8x32xf32, #tpu.memory_space<vmem>>, vector<8x32xf32>
    %1 = arith.truncf %0 : vector<8x32xf32> to vector<8x32xbf16>
    %c0_1 = arith.constant 0 : index
    %c0_2 = arith.constant 0 : index
    %2 = vector.load %arg4[%c0_1, %c0_2] : memref<96x32xbf16, #tpu.memory_space<vmem>>, vector<32x32xbf16>
    %cst = arith.constant dense<0.000000e+00> : vector<8x32xf32>
    %3 = tpu.matmul %1, %2, %cst {dimension_numbers = #tpu.dot_dimension_numbers<[1], [0], [0], [1], [0, 0, 1, 1], [], []>} : vector<8x32xbf16>, vector<32x32xbf16>, vector<8x32xf32> -> vector<8x32xf32>
    %c0_3 = arith.constant 0 : index
    %c0_4 = arith.constant 0 : index
    %4 = vector.load %arg2[%c0_3, %c0_4] : memref<8x32xf32, #tpu.memory_space<vmem>>, vector<8x32xf32>
    %5 = arith.truncf %4 : vector<8x32xf32> to vector<8x32xbf16>
    %c32 = arith.constant 32 : index
    %c0_5 = arith.constant 0 : index
    %6 = vector.load %arg4[%c32, %c0_5] : memref<96x32xbf16, #tpu.memory_space<vmem>>, vector<32x32xbf16>
    %cst_6 = arith.constant dense<0.000000e+00> : vector<8x32xf32>
    %7 = tpu.matmul %5, %6, %cst_6 {dimension_numbers = #tpu.dot_dimension_numbers<[1], [0], [0], [1], [0, 0, 1, 1], [], []>} : vector<8x32xbf16>, vector<32x32xbf16>, vector<8x32xf32> -> vector<8x32xf32>
    %8 = arith.addf %3, %7 : vector<8x32xf32>
    %c0_7 = arith.constant 0 : index
    %c0_8 = arith.constant 0 : index
    %9 = vector.load %arg3[%c0_7, %c0_8] : memref<8x32xf32, #tpu.memory_space<vmem>>, vector<8x32xf32>
    %10 = arith.truncf %9 : vector<8x32xf32> to vector<8x32xbf16>
    %c64 = arith.constant 64 : index
    %c0_9 = arith.constant 0 : index
    %11 = vector.load %arg4[%c64, %c0_9] : memref<96x32xbf16, #tpu.memory_space<vmem>>, vector<32x32xbf16>
    %cst_10 = arith.constant dense<0.000000e+00> : vector<8x32xf32>
    %12 = tpu.matmul %10, %11, %cst_10 {dimension_numbers = #tpu.dot_dimension_numbers<[1], [0], [0], [1], [0, 0, 1, 1], [], []>} : vector<8x32xbf16>, vector<32x32xbf16>, vector<8x32xf32> -> vector<8x32xf32>
    %13 = arith.addf %8, %12 : vector<8x32xf32>
    %c0_11 = arith.constant 0 : index
    %c0_12 = arith.constant 0 : index
    %14 = vector.load %arg5[%c0_11, %c0_12] : memref<1x32xf32, #tpu.memory_space<vmem>>, vector<1x32xf32>
    %15 = vector.broadcast %14 : vector<1x32xf32> to vector<8x32xf32>
    %16 = arith.addf %13, %15 : vector<8x32xf32>
    %17 = arith.mulf %16, %16 : vector<8x32xf32>
    %18 = arith.mulf %16, %17 : vector<8x32xf32>
    %cst_13 = arith.constant 4.471500e-02 : f32
    %19 = vector.broadcast %cst_13 : f32 to vector<8x32xf32>
    %20 = arith.mulf %19, %18 : vector<8x32xf32>
    %21 = arith.addf %16, %20 : vector<8x32xf32>
    %cst_14 = arith.constant 0.797884583 : f32
    %22 = vector.broadcast %cst_14 : f32 to vector<8x32xf32>
    %23 = arith.mulf %22, %21 : vector<8x32xf32>
    %24 = math.tanh %23 : vector<8x32xf32>
    %cst_15 = arith.constant 1.000000e+00 : f32
    %25 = vector.broadcast %cst_15 : f32 to vector<8x32xf32>
    %26 = arith.addf %25, %24 : vector<8x32xf32>
    %cst_16 = arith.constant 5.000000e-01 : f32
    %27 = vector.broadcast %cst_16 : f32 to vector<8x32xf32>
    %28 = arith.mulf %27, %26 : vector<8x32xf32>
    %29 = arith.mulf %16, %28 : vector<8x32xf32>
    %cst_17 = arith.constant dense<0.000000e+00> : vector<8xf32>
    %30 = vector.multi_reduction <add>, %29, %cst_17 [1] : vector<8x32xf32> to vector<8xf32>
    %31 = vector.shape_cast %30 : vector<8xf32> to vector<8x1xf32>
    %cst_18 = arith.constant 3.200000e+01 : f32
    %32 = vector.broadcast %cst_18 : f32 to vector<8x1xf32>
    %33 = arith.divf %31, %32 : vector<8x1xf32>
    %34 = arith.mulf %29, %29 : vector<8x32xf32>
    %cst_19 = arith.constant dense<0.000000e+00> : vector<8xf32>
    %35 = vector.multi_reduction <add>, %34, %cst_19 [1] : vector<8x32xf32> to vector<8xf32>
    %36 = vector.shape_cast %35 : vector<8xf32> to vector<8x1xf32>
    %cst_20 = arith.constant 3.200000e+01 : f32
    %37 = vector.broadcast %cst_20 : f32 to vector<8x1xf32>
    %38 = arith.divf %36, %37 : vector<8x1xf32>
    %39 = arith.mulf %33, %33 : vector<8x1xf32>
    %40 = arith.subf %38, %39 : vector<8x1xf32>
    %cst_21 = arith.constant 0.000000e+00 : f32
    %41 = vector.broadcast %cst_21 : f32 to vector<8x1xf32>
    %42 = arith.maximumf %40, %41 : vector<8x1xf32>
    %43 = vector.broadcast %33 : vector<8x1xf32> to vector<8x32xf32>
    %44 = arith.subf %29, %43 : vector<8x32xf32>
    %cst_22 = arith.constant 9.99999996E-13 : f32
    %45 = vector.broadcast %cst_22 : f32 to vector<8x1xf32>
    %46 = arith.addf %42, %45 : vector<8x1xf32>
    %47 = math.rsqrt %46 : vector<8x1xf32>
    %48 = vector.broadcast %47 : vector<8x1xf32> to vector<8x32xf32>
    %49 = arith.mulf %44, %48 : vector<8x32xf32>
    %50 = arith.truncf %49 : vector<8x32xf32> to vector<8x32xbf16>
    %c0_23 = arith.constant 0 : index
    %c0_24 = arith.constant 0 : index
    %51 = vector.load %arg6[%c0_23, %c0_24] : memref<32x128xbf16, #tpu.memory_space<vmem>>, vector<32x128xbf16>
    %cst_25 = arith.constant dense<0.000000e+00> : vector<8x128xf32>
    %52 = tpu.matmul %50, %51, %cst_25 {dimension_numbers = #tpu.dot_dimension_numbers<[1], [0], [0], [1], [0, 0, 1, 1], [], []>} : vector<8x32xbf16>, vector<32x128xbf16>, vector<8x128xf32> -> vector<8x128xf32>
    %c0_26 = arith.constant 0 : index
    %c0_27 = arith.constant 0 : index
    %53 = vector.load %arg7[%c0_26, %c0_27] : memref<1x128xf32, #tpu.memory_space<vmem>>, vector<1x128xf32>
    %54 = vector.broadcast %53 : vector<1x128xf32> to vector<8x128xf32>
    %55 = arith.addf %52, %54 : vector<8x128xf32>
    %56 = arith.truncf %55 : vector<8x128xf32> to vector<8x128xbf16>
    %c0_28 = arith.constant 0 : index
    %c0_29 = arith.constant 0 : index
    %57 = vector.load %arg8[%c0_28, %c0_29] : memref<8x128xbf16, #tpu.memory_space<vmem>>, vector<8x128xbf16>
    tpu.vector_store %arg8[%c0_28, %c0_29], %56 {strides = array<i32>} : memref<8x128xbf16, #tpu.memory_space<vmem>>, vector<8x128xbf16>,
    return
  }
  func.func @transform_0(%arg0: i32) -> (i32, i32) {
    %c0_i32 = arith.constant 0 : i32
    %c0_i32_0 = arith.constant 0 : i32
    return %arg0, %c0_i32 : i32, i32
  }
  func.func @transform_1(%arg0: i32) -> (i32, i32) {
    %c0_i32 = arith.constant 0 : i32
    %c0_i32_0 = arith.constant 0 : i32
    return %arg0, %c0_i32 : i32, i32
  }
  func.func @transform_2(%arg0: i32) -> (i32, i32) {
    %c0_i32 = arith.constant 0 : i32
    %c0_i32_0 = arith.constant 0 : i32
    return %arg0, %c0_i32 : i32, i32
  }
  func.func @transform_3(%arg0: i32) -> (i32, i32) {
    %c0_i32 = arith.constant 0 : i32
    %c0_i32_0 = arith.constant 0 : i32
    %c0_i32_1 = arith.constant 0 : i32
    return %c0_i32, %c0_i32_0 : i32, i32
  }
  func.func @transform_4(%arg0: i32) -> (i32, i32) {
    %c0_i32 = arith.constant 0 : i32
    %c0_i32_0 = arith.constant 0 : i32
    %c0_i32_1 = arith.constant 0 : i32
    return %c0_i32, %c0_i32_0 : i32, i32
  }
  func.func @transform_5(%arg0: i32) -> (i32, i32) {
    %c0_i32 = arith.constant 0 : i32
    %c0_i32_0 = arith.constant 0 : i32
    %c0_i32_1 = arith.constant 0 : i32
    return %c0_i32, %c0_i32_0 : i32, i32
  }
  func.func @transform_6(%arg0: i32) -> (i32, i32) {
    %c0_i32 = arith.constant 0 : i32
    %c0_i32_0 = arith.constant 0 : i32
    %c0_i32_1 = arith.constant 0 : i32
    return %c0_i32, %c0_i32_0 : i32, i32
  }
  func.func @transform_7(%arg0: i32) -> (i32, i32) {
    %c0_i32 = arith.constant 0 : i32
    %c0_i32_0 = arith.constant 0 : i32
    return %arg0, %c0_i32 : i32, i32
  }
}

</mosaic_0001>

<bundles_post_ra>
// kernel: tpu_custom_call.1
= control target key start
LH: loop header
LB: loop body
LE: loop exit
PB: predicated region body
PF: predicated region fallthrough
CT: control target
= control target key end

     0   :  { %s403_s0 = inlined_call_operand.vmem [shape: f32[8,32], index: 0, kind: input, shape index: {}]   ;;  %s404_s1 = inlined_call_operand.vmem [shape: f32[8,32], index: 1, kind: input, shape index: {}]   ;;  %s405_s2 = inlined_call_operand.vmem [shape: f32[8,32], index: 2, kind: input, shape index: {}]   ;;  %s406_s3 = inlined_call_operand.vmem [shape: bf16[96,32], index: 3, kind: input, shape index: {}]   ;;  %s407_s4 = inlined_call_operand.vmem [shape: f32[1,32], index: 4, kind: input, shape index: {}]   ;;  %s408_s5 = inlined_call_operand.vmem [shape: bf16[32,128], index: 5, kind: input, shape index: {}]   ;;  %s409_s6 = inlined_call_operand.vmem [shape: f32[1,128], index: 6, kind: input, shape index: {}]   ;;  %s410_s7 = inlined_call_operand.hbm [shape: bf16[8,128], index: 7, kind: output, shape index: {}]  }
   0x1   :  { %v272_v0 = vld [vmem:[%s406_s3 + $0x18] sm:$0xff]  ;;  %v270_v1 = vld [vmem:[%s406_s3 + $0x8] sm:$0xff]  ;;  %v271_v3 = vld [vmem:[%s406_s3 + $0x10] sm:$0xff] }
   0x2   :  { %v274_v2 = vld [vmem:[%s406_s3 + $0x28] sm:$0xff]  ;;  %v269_v4 = vld [vmem:[%s406_s3] sm:$0xff]  ;;  %62 = vmatpush.bf16.msra.mxu0 %v272_v0  ;;  %90 = vmatpush.bf16.msra.mxu1 %v270_v1 }
   0x3   :  { %v273_v5 = vld [vmem:[%s406_s3 + $0x20] sm:$0xff]  ;;  %124 = vmatpush.bf16.msra.mxu2 %v274_v2 }
   0x4   :  { %v34_v6 = vld [vmem:[%s404_s1] sm:$0xff] }
   0x5   :  { %v28_v7 = vld [vmem:[%s403_s0] sm:$0xff] }
   0x6   :  { %v97_v8 = vld [vmem:[%s405_s2] sm:$0xff] }
   0x7   :  { %12 = vsyncpa [#allocation3], 0  ;;  %v35_v9 = vpack.c.bf16 %v34_v6, %v34_v6  ;;  %v29_v10 = vpack.c.bf16 %v28_v7, %v28_v7  ;;  %63 = vmatpush.bf16.msra.mxu0 %v271_v3  ;;  %91 = vmatpush.bf16.msra.mxu1 %v269_v4  ;;  %vm52_vm0 = vcmask 261120   ;;  %v98_v11 = vpack.c.bf16 %v97_v8, %v97_v8  ;;  %v279_v15 = vld [vmem:[%s407_s4] ss:$0 sm:$0xff]  ;;  %v276_v40 = vld [vmem:[%s408_s5 + $0x8] sm:$0xff] }
   0x8   :  { %125 = vmatpush.bf16.msra.mxu2 %v273_v5  ;;  %v313_v34 = vmov 32.0   ;;  %208 = vmatpush.bf16.msra.mxu3 %v276_v40  ;;  %v275_v42 = vld [vmem:[%s408_s5] sm:$0xff]  ;;  %s314_s21 = smov [#allocation2]   ;;  %s224_s25 = sshll.u32 %s410_s7, 4  ;;  %s225_s25 = int_to_ptr.hbm [resolvable:$true] %s224_s25 }
   0x9   :  { %v280_v61 = vld [vmem:[%s409_s6] ss:$0 sm:$0xff]  ;;  %s222_s22 = sshll.u32 %s314_s21, 4  ;;  %s223_s22 = int_to_ptr.vmem [resolvable:$true] %s222_s22 }
   0xa   :  { %241 = vmatmul.msk.bf16.vlgmr.msra.gmra.mxu0 %vm52_vm0, %v35_v9  ;;  %250 = vmatmul.msk.bf16.vlgmr.msra.gmra.mxu1 %vm52_vm0, %v29_v10 }
   0xb   :  { %259 = vmatmul.msk.bf16.vlgmr.msra.gmra.mxu2 %vm52_vm0, %v98_v11 }
   0xc   :  { %209 = vmatpush.bf16.msra.mxu3 %v275_v42 }
  0x87   :  { %v65_v12 = vpop.f32.mrf.mxu0  ;;  %v93_v13 = vpop.f32.mrf.mxu1 }
  0x88   :  { %v94_v14 = vadd.f32 %v93_v13, %v65_v12 }
  0x8e   :  { %v127_v16 = vpop.f32.mrf.mxu2 }
  0x8f   :  { %v131_v17 = vadd.f32 %v127_v16, %v94_v14  ;;  %v67_v18 = vpop.f32.mrf.mxu0  ;;  %v95_v19 = vpop.f32.mrf.mxu1 }
  0x91   :  { %v136_v20 = vadd.f32 %v279_v15, %v131_v17 }
  0x93   :  { %v137_v21 = vmul.f32 %v136_v20, %v136_v20 }
  0x95   :  { %v138_v22 = vmul.f32 %v137_v21, %v136_v20 }
  0x96   :  { %v129_v23 = vpop.f32.mrf.mxu2 }
  0x97   :  { %v139_v24 = vmul.f32 0.044715, %v138_v22 }
  0x99   :  { %v140_v25 = vadd.f32 %v139_v24, %v136_v20 }
  0x9b   :  { %v141_v26 = vmul.f32 0.7978846, %v140_v25 }
  0x9d   :  { %281 = vtanh.f32 %v141_v26 }
  0x9e   :  { %283 = vrcp.f32 %v313_v34 }
  0xa3   :  { %v282_v27 = vpop.eup %281 }
  0xa4   :  { %v143_v28 = vadd.f32 1.0, %v282_v27  ;;  %v284_v35 = vpop.eup %283 }
  0xa5   :  { %v150_v36 = vmul.f32 32.0, %v284_v35  ;;  %vm154_vm1 = vweird.f32 %v284_v35 }
  0xa6   :  { %v144_v29 = vmul.f32 0.5, %v143_v28 }
  0xa7   :  { %v151_v37 = vsub.f32 1.0, %v150_v36 }
  0xa8   :  { %v145_v30 = vmul.f32 %v144_v29, %v136_v20 }
  0xa9   :  { %v152_v38 = vmul.f32 %v284_v35, %v151_v37 }
  0xaa   :  { %v146_v31 = vsel %vm52_vm0, %v145_v30, 0.0  ;;  %v157_v32 = vmul.f32 %v145_v30, %v145_v30 }
  0xab   :  { %147 = vadd.xlane.f32.xlu0 %v146_v31  ;;  %v153_v39 = vadd.f32 %v284_v35, %v152_v38 }
  0xac   :  { %v158_v33 = vsel %vm52_vm0, %v157_v32, 0.0 }
  0xad   :  { %v155_v43 = vsel %vm154_vm1, %v284_v35, %v153_v39 }
  0xb3   :  { %159 = vadd.xlane.f32.xlu0 %v158_v33 }
 0x11e   :  { %v148_v41 = vpop.xlane.xlu0 %147 }
 0x11f   :  { %v156_v44 = vmul.f32 %v155_v43, %v148_v41 }
 0x121   :  { %v162_v46 = vmul.f32 %v156_v44, %v156_v44  ;;  %v165_v57 = vsub.f32 %v145_v30, %v156_v44 }
 0x126   :  { %v160_v45 = vpop.xlane.xlu0 %159 }
 0x127   :  { %v161_v47 = vmul.f32 %v160_v45, %v155_v43 }
 0x129   :  { %v163_v48 = vsub.f32 %v161_v47, %v162_v46 }
 0x12b   :  { %v164_v49 = vmax.f32 %v163_v48, 0.0 }
 0x12d   :  { %v166_v50 = vadd.f32 1e-12, %v164_v49 }
 0x12f   :  { %285 = vrsqrt.f32 %v166_v50  ;;  %vm173_vm3 = vweird.f32 %v166_v50 }
 0x135   :  { %v286_v51 = vpop.eup %285 }
 0x136   :  { %v168_v52 = vmul.f32 %v286_v51, %v166_v50  ;;  %vm174_vm2 = vweird.f32 %v286_v51 }
 0x137   :  { %vm175_vm4 = vmor %vm173_vm3, %vm174_vm2 }
 0x138   :  { %v169_v53 = vmul.f32 %v286_v51, %v168_v52 }
 0x13a   :  { %v170_v54 = vmul.f32 0.5, %v169_v53 }
 0x13c   :  { %v171_v55 = vsub.f32 1.5, %v170_v54 }
 0x13e   :  { %v172_v56 = vmul.f32 %v286_v51, %v171_v55 }
 0x140   :  { %v176_v58 = vsel %vm175_vm4, %v286_v51, %v172_v56 }
 0x141   :  { %v177_v59 = vmul.f32 %v176_v58, %v165_v57 }
 0x143   :  { %v178_v60 = vpack.c.bf16 %v177_v59, %v177_v59 }
 0x145   :  { %268 = vmatmul.msk.bf16.vlgmr.msra.gmra.mxu3 %vm52_vm0, %v178_v60 }
 0x1c8   :  { %v211_v62 = vpop.f32.mrf.mxu3 }
 0x1c9   :  { %v212_v63 = vadd.f32 %v280_v61, %v211_v62 }
 0x1cb   :  { %v215_v0 = vpack.c.bf16 %v212_v63, %v212_v63 }
 0x1cd   :  { %216 = vst [vmem:[#allocation2] sm:$0xf] %v215_v0 }
 0x1ce   :  { %227 = dma.vmem_to_hbm [thread:$0]  %s223_s22, 64, %s225_s25, [#allocation3]  }
 0x1d0   :  { %v213_v1 = vpop.f32.mrf.mxu3 }
 0x1d1   :  { %311 = dma.done.wait [#allocation3], 64  }
 0x1d2   :  { %312 = vsyncadd [#allocation3], 4294967232 }
 0x1d3   :  { %232 = vsyncpa [#allocation3], 1 }

// kernel: tpu_custom_call.1
= control target key start
LH: loop header
LB: loop body
LE: loop exit
PB: predicated region body
PF: predicated region fallthrough
CT: control target
= control target key end

     0   :  { %s403_s0 = inlined_call_operand.vmem [shape: f32[8,32], index: 0, kind: input, shape index: {}]   ;;  %s404_s1 = inlined_call_operand.vmem [shape: f32[8,32], index: 1, kind: input, shape index: {}]   ;;  %s405_s2 = inlined_call_operand.vmem [shape: f32[8,32], index: 2, kind: input, shape index: {}]   ;;  %s406_s3 = inlined_call_operand.vmem [shape: bf16[96,32], index: 3, kind: input, shape index: {}]   ;;  %s407_s4 = inlined_call_operand.vmem [shape: f32[1,32], index: 4, kind: input, shape index: {}]   ;;  %s408_s5 = inlined_call_operand.vmem [shape: bf16[32,128], index: 5, kind: input, shape index: {}]   ;;  %s409_s6 = inlined_call_operand.vmem [shape: f32[1,128], index: 6, kind: input, shape index: {}]   ;;  %s410_s7 = inlined_call_operand.hbm [shape: bf16[8,128], index: 7, kind: output, shape index: {}]  }
   0x1   :  { %v272_v0 = vld [vmem:[%s406_s3 + $0x18] sm:$0xff]  ;;  %v270_v1 = vld [vmem:[%s406_s3 + $0x8] sm:$0xff]  ;;  %v271_v3 = vld [vmem:[%s406_s3 + $0x10] sm:$0xff] }
   0x2   :  { %v274_v2 = vld [vmem:[%s406_s3 + $0x28] sm:$0xff]  ;;  %v269_v4 = vld [vmem:[%s406_s3] sm:$0xff]  ;;  %62 = vmatpush.bf16.msra.mxu0 %v272_v0  ;;  %90 = vmatpush.bf16.msra.mxu1 %v270_v1 }
   0x3   :  { %v273_v5 = vld [vmem:[%s406_s3 + $0x20] sm:$0xff]  ;;  %124 = vmatpush.bf16.msra.mxu2 %v274_v2 }
   0x4   :  { %v34_v6 = vld [vmem:[%s404_s1] sm:$0xff] }
   0x5   :  { %v28_v7 = vld [vmem:[%s403_s0] sm:$0xff] }
   0x6   :  { %v97_v8 = vld [vmem:[%s405_s2] sm:$0xff] }
   0x7   :  { %12 = vsyncpa [#allocation3], 0  ;;  %v35_v9 = vpack.c.bf16 %v34_v6, %v34_v6  ;;  %v29_v10 = vpack.c.bf16 %v28_v7, %v28_v7  ;;  %63 = vmatpush.bf16.msra.mxu0 %v271_v3  ;;  %91 = vmatpush.bf16.msra.mxu1 %v269_v4  ;;  %vm52_vm0 = vcmask 261120   ;;  %v98_v11 = vpack.c.bf16 %v97_v8, %v97_v8  ;;  %v279_v15 = vld [vmem:[%s407_s4] ss:$0 sm:$0xff]  ;;  %v276_v40 = vld [vmem:[%s408_s5 + $0x8] sm:$0xff] }
   0x8   :  { %125 = vmatpush.bf16.msra.mxu2 %v273_v5  ;;  %v313_v34 = vmov 32.0   ;;  %208 = vmatpush.bf16.msra.mxu3 %v276_v40  ;;  %v275_v42 = vld [vmem:[%s408_s5] sm:$0xff]  ;;  %s314_s21 = smov [#allocation2]   ;;  %s224_s25 = sshll.u32 %s410_s7, 4  ;;  %s225_s25 = int_to_ptr.hbm [resolvable:$true] %s224_s25 }
   0x9   :  { %v280_v61 = vld [vmem:[%s409_s6] ss:$0 sm:$0xff]  ;;  %s222_s22 = sshll.u32 %s314_s21, 4  ;;  %s223_s22 = int_to_ptr.vmem [resolvable:$true] %s222_s22 }
   0xa   :  { %241 = vmatmul.msk.bf16.vlgmr.msra.gmra.mxu0 %vm52_vm0, %v35_v9  ;;  %250 = vmatmul.msk.bf16.vlgmr.msra.gmra.mxu1 %vm52_vm0, %v29_v10 }
   0xb   :  { %259 = vmatmul.msk.bf16.vlgmr.msra.gmra.mxu2 %vm52_vm0, %v98_v11 }
   0xc   :  { %209 = vmatpush.bf16.msra.mxu3 %v275_v42 }
  0x87   :  { %v65_v12 = vpop.f32.mrf.mxu0  ;;  %v93_v13 = vpop.f32.mrf.mxu1 }
  0x88   :  { %v94_v14 = vadd.f32 %v93_v13, %v65_v12 }
  0x8e   :  { %v127_v16 = vpop.f32.mrf.mxu2 }
  0x8f   :  { %v131_v17 = vadd.f32 %v127_v16, %v94_v14  ;;  %v67_v18 = vpop.f32.mrf.mxu0  ;;  %v95_v19 = vpop.f32.mrf.mxu1 }
  0x91   :  { %v136_v20 = vadd.f32 %v279_v15, %v131_v17 }
  0x93   :  { %v137_v21 = vmul.f32 %v136_v20, %v136_v20 }
  0x95   :  { %v138_v22 = vmul.f32 %v137_v21, %v136_v20 }
  0x96   :  { %v129_v23 = vpop.f32.mrf.mxu2 }
  0x97   :  { %v139_v24 = vmul.f32 0.044715, %v138_v22 }
  0x99   :  { %v140_v25 = vadd.f32 %v139_v24, %v136_v20 }
  0x9b   :  { %v141_v26 = vmul.f32 0.7978846, %v140_v25 }
  0x9d   :  { %281 = vtanh.f32 %v141_v26 }
  0x9e   :  { %283 = vrcp.f32 %v313_v34 }
  0xa3   :  { %v282_v27 = vpop.eup %281 }
  0xa4   :  { %v143_v28 = vadd.f32 1.0, %v282_v27  ;;  %v284_v35 = vpop.eup %283 }
  0xa5   :  { %v150_v36 = vmul.f32 32.0, %v284_v35  ;;  %vm154_vm1 = vweird.f32 %v284_v35 }
  0xa6   :  { %v144_v29 = vmul.f32 0.5, %v143_v28 }
  0xa7   :  { %v151_v37 = vsub.f32 1.0, %v150_v36 }
  0xa8   :  { %v145_v30 = vmul.f32 %v144_v29, %v136_v20 }
  0xa9   :  { %v152_v38 = vmul.f32 %v284_v35, %v151_v37 }
  0xaa   :  { %v146_v31 = vsel %vm52_vm0, %v145_v30, 0.0  ;;  %v157_v32 = vmul.f32 %v145_v30, %v145_v30 }
  0xab   :  { %147 = vadd.xlane.f32.xlu0 %v146_v31  ;;  %v153_v39 = vadd.f32 %v284_v35, %v152_v38 }
  0xac   :  { %v158_v33 = vsel %vm52_vm0, %v157_v32, 0.0 }
  0xad   :  { %v155_v43 = vsel %vm154_vm1, %v284_v35, %v153_v39 }
  0xb3   :  { %159 = vadd.xlane.f32.xlu0 %v158_v33 }
 0x11e   :  { %v148_v41 = vpop.xlane.xlu0 %147 }
 0x11f   :  { %v156_v44 = vmul.f32 %v155_v43, %v148_v41 }
 0x121   :  { %v162_v46 = vmul.f32 %v156_v44, %v156_v44  ;;  %v165_v57 = vsub.f32 %v145_v30, %v156_v44 }
 0x126   :  { %v160_v45 = vpop.xlane.xlu0 %159 }
 0x127   :  { %v161_v47 = vmul.f32 %v160_v45, %v155_v43 }
 0x129   :  { %v163_v48 = vsub.f32 %v161_v47, %v162_v46 }
 0x12b   :  { %v164_v49 = vmax.f32 %v163_v48, 0.0 }
 0x12d   :  { %v166_v50 = vadd.f32 1e-12, %v164_v49 }
 0x12f   :  { %285 = vrsqrt.f32 %v166_v50  ;;  %vm173_vm3 = vweird.f32 %v166_v50 }
 0x135   :  { %v286_v51 = vpop.eup %285 }
 0x136   :  { %v168_v52 = vmul.f32 %v286_v51, %v166_v50  ;;  %vm174_vm2 = vweird.f32 %v286_v51 }
 0x137   :  { %vm175_vm4 = vmor %vm173_vm3, %vm174_vm2 }
 0x138   :  { %v169_v53 = vmul.f32 %v286_v51, %v168_v52 }
 0x13a   :  { %v170_v54 = vmul.f32 0.5, %v169_v53 }
 0x13c   :  { %v171_v55 = vsub.f32 1.5, %v170_v54 }
 0x13e   :  { %v172_v56 = vmul.f32 %v286_v51, %v171_v55 }
 0x140   :  { %v176_v58 = vsel %vm175_vm4, %v286_v51, %v172_v56 }
 0x141   :  { %v177_v59 = vmul.f32 %v176_v58, %v165_v57 }
 0x143   :  { %v178_v60 = vpack.c.bf16 %v177_v59, %v177_v59 }
 0x145   :  { %268 = vmatmul.msk.bf16.vlgmr.msra.gmra.mxu3 %vm52_vm0, %v178_v60 }
 0x1c8   :  { %v211_v62 = vpop.f32.mrf.mxu3 }
 0x1c9   :  { %v212_v63 = vadd.f32 %v280_v61, %v211_v62 }
 0x1cb   :  { %v215_v0 = vpack.c.bf16 %v212_v63, %v212_v63 }
 0x1cd   :  { %216 = vst [vmem:[#allocation2] sm:$0xf] %v215_v0 }
 0x1ce   :  { %227 = dma.vmem_to_hbm [thread:$0]  %s223_s22, 64, %s225_s25, [#allocation3]  }
 0x1d0   :  { %v213_v1 = vpop.f32.mrf.mxu3 }
 0x1d1   :  { %311 = dma.done.wait [#allocation3], 64  }
 0x1d2   :  { %312 = vsyncadd [#allocation3], 4294967232 }
 0x1d3   :  { %232 = vsyncpa [#allocation3], 1 }

</bundles_post_ra>
